<compile_context>
chip_gen: v7x
topology: tpu7x:2x2x1
jax: 0.10.0
libtpu: 0.0.40
codegen_flags: <defaults>
</compile_context>

<pallas_src>
import jax
import jax.numpy as jnp
from jax import lax
from jax.experimental import pallas as pl
from jax.experimental.pallas import tpu as pltpu

LANES = 128
SUBLANES = 8


def _round_up(x, m):
    return ((x + m - 1) // m) * m


def _make_mse_kernel(rows, tile_rows, steps, need_mask):
    """Partial sum-of-squared-differences over (tile_rows, 128) slabs."""

    def kernel(p_ref, r_ref, out_ref):
        c = pl.program_id(0)   # core-split axis ("parallel")
        i = pl.program_id(1)   # reduction axis ("arbitrary")

        @pl.when(i == 0)
        def _init():
            out_ref[...] = jnp.zeros_like(out_ref)

        d = p_ref[...].astype(jnp.float32) - r_ref[...].astype(jnp.float32)
        sq = d * d

        if need_mask:
            # Zero contributions from rows past the logical end of the array
            # (partial trailing block and/or clamped out-of-range grid step).
            row0 = (c * steps + i) * tile_rows
            ridx = row0 + lax.broadcasted_iota(jnp.int32, (tile_rows, LANES), 0)
            sq = jnp.where(ridx < rows, sq, jnp.float32(0.0))

        # (tile_rows,128) -> (tile_rows//8, 8, 128): minor (8,128) tile is
        # preserved, so the axis-0 sum is a chain of elementwise vreg adds
        # (VPU only); no cross-lane/sublane work in the hot loop.
        out_ref[...] += sq.reshape(tile_rows // SUBLANES, SUBLANES, LANES).sum(axis=0)

    return kernel


def _mse_sum_pallas(p2d, r2d, rows, tile_rows):
    """Sum of squared differences over a [rows, 128] slab (first `rows` rows valid)."""
    # Row alignment: 8 sublanes for 32-bit, 16 for 16-bit, 32 for 8-bit dtypes.
    itemsize = jnp.dtype(p2d.dtype).itemsize
    row_align = SUBLANES * max(1, 4 // itemsize)

    # Tile: as large as requested, aligned, never (much) bigger than the array.
    tile_rows = max(row_align, min(tile_rows, _round_up(rows, row_align)))
    tile_rows = _round_up(tile_rows, row_align)

    total_blocks = pl.cdiv(rows, tile_rows)
    # Split the reduction across 2 grid-parallel chunks so megacore parts
    # (v7x: 2 TensorCores) each drive their own HBM reads; serial elsewhere.
    num_splits = 2 if total_blocks >= 2 else 1
    steps = pl.cdiv(total_blocks, num_splits)
    overshoot = (num_splits * steps) > total_blocks          # need index clamp
    need_mask = (num_splits * steps * tile_rows) != rows     # pad rows or overshoot

    if overshoot:
        def in_map(c, i):
            # Clamp so an out-of-range grid step re-reads an in-bounds block;
            # its contribution is masked to zero inside the kernel.
            return (jnp.minimum(c * steps + i, total_blocks - 1), 0)
    else:
        def in_map(c, i):
            return (c * steps + i, 0)

    kernel = _make_mse_kernel(rows, tile_rows, steps, need_mask)

    partial = pl.pallas_call(
        kernel,
        out_shape=jax.ShapeDtypeStruct((num_splits * SUBLANES, LANES), jnp.float32),
        grid_spec=pltpu.PrefetchScalarGridSpec(
            num_scalar_prefetch=0,
            grid=(num_splits, steps),
            in_specs=[
                pl.BlockSpec((tile_rows, LANES), in_map),
                pl.BlockSpec((tile_rows, LANES), in_map),
            ],
            out_specs=pl.BlockSpec((SUBLANES, LANES), lambda c, i: (c, 0)),
        ),
        compiler_params=pltpu.CompilerParams(
            dimension_semantics=("parallel", "arbitrary"),
        ),
    )(p2d, r2d)

    # Single cross-lane/sublane reduction of the lane-dense partials.
    return jnp.sum(partial)


def seg_regression_loss(pred, real, *, tile_rows=2048, min_kernel_elems=1 << 15,
                        force_kernel=False):
    """Equivalent of torch.nn.functional.mse_loss(pred, real) (mean reduction)."""
    assert pred.shape == real.shape, "mse_loss requires matching shapes"
    n = pred.size

    if not force_kernel and n < min_kernel_elems:
        # Tiny tensors: a fused XLA reduction beats kernel launch + pipeline
        # prologue overhead.  The kernel path remains forceable for testing.
        d = pred.astype(jnp.float32) - real.astype(jnp.float32)
        return jnp.sum(d * d) / jnp.float32(n)

    p = pred.reshape(-1)
    r = real.reshape(-1)
    rem = n % LANES
    if rem:
        # Rare path: pad only to the next lane multiple.  Zero padding is
        # identical in both operands, so it contributes 0 to the sum.
        pad = LANES - rem
        p = jnp.pad(p, (0, pad))
        r = jnp.pad(r, (0, pad))
    rows = (n + LANES - 1) // LANES
    p = p.reshape(rows, LANES)
    r = r.reshape(rows, LANES)

    return _mse_sum_pallas(p, r, rows, tile_rows) / jnp.float32(n)


if __name__ == "__main__":
    key = jax.random.PRNGKey(0)

    def ref_mse(a, b):
        return jnp.mean((a.astype(jnp.float32) - b.astype(jnp.float32)) ** 2)

    # 1) Shapes matching the regression head outputs: NCHW (2, 4, 16, 16).
    #    Force the Pallas kernel path so the kernel actually runs on TPU.
    k1, k2 = jax.random.split(key)
    pred = jax.random.normal(k1, (2, 4, 16, 16), dtype=jnp.float32)
    real = jax.random.normal(k2, (2, 4, 16, 16), dtype=jnp.float32)
    loss = seg_regression_loss(pred, real, force_kernel=True)
    jax.block_until_ready(loss)
    assert jnp.allclose(loss, ref_mse(pred, real), rtol=1e-4, atol=1e-6), loss

    # Auto-dispatch path (tiny input -> fused jnp reduction).
    loss_auto = seg_regression_loss(pred, real)
    jax.block_until_ready(loss_auto)
    assert jnp.allclose(loss_auto, ref_mse(pred, real), rtol=1e-4, atol=1e-6)

    # 2) Non-lane-multiple element count: exercises tail pad + in-kernel mask.
    k3, k4 = jax.random.split(k1)
    p2 = jax.random.normal(k3, (3, 5, 17, 19), dtype=jnp.float32)
    r2 = jax.random.normal(k4, (3, 5, 17, 19), dtype=jnp.float32)
    l2 = seg_regression_loss(p2, r2, force_kernel=True)
    jax.block_until_ready(l2)
    assert jnp.allclose(l2, ref_mse(p2, r2), rtol=1e-4, atol=1e-6), l2

    # 3) Larger input with tile_rows=768: multi-step grid, 2-way core split,
    #    odd block count -> clamped out-of-range grid step + mask.
    k5, k6 = jax.random.split(k2)
    p3 = jax.random.normal(k5, (8, 8, 64, 64), dtype=jnp.float32)
    r3 = jax.random.normal(k6, (8, 8, 64, 64), dtype=jnp.float32)
    l3 = seg_regression_loss(p3, r3, tile_rows=768)
    jax.block_until_ready(l3)
    assert jnp.allclose(l3, ref_mse(p3, r3), rtol=1e-4, atol=1e-6), l3

    print("KERNEL_OK")
</pallas_src>

<mosaic_0001>
module attributes {stable_mosaic.version = 11 : i64} {
  func.func @kernel(%arg0: i32, %arg1: i32, %arg2: memref<16x128xf32, #tpu.memory_space<vmem>>, %arg3: memref<16x128xf32, #tpu.memory_space<vmem>>, %arg4: memref<8x128xf32, #tpu.memory_space<vmem>>) attributes {dimension_semantics = [#tpu.dimension_semantics<parallel>, #tpu.dimension_semantics<arbitrary>], iteration_bounds = array<i64: 1, 1>, scalar_prefetch = 0 : i64, scratch_operands = 0 : i64, tpu.core_type = #tpu.core_type<tc>, window_params = [{transform_indices = @transform_0, window_bounds = array<i64: 16, 128>}, {transform_indices = @transform_1, window_bounds = array<i64: 16, 128>}, {transform_indices = @transform_2, window_bounds = array<i64: 8, 128>}]} {
    %c0_i32 = arith.constant 0 : i32
    %0 = arith.cmpi eq, %arg1, %c0_i32 : i32
    %1 = arith.extui %0 : i1 to i32
    %c0_i32_0 = arith.constant 0 : i32
    %2 = arith.cmpi ne, %1, %c0_i32_0 : i32
    scf.if %2 {
      %cst_8 = arith.constant 0.000000e+00 : f32
      %12 = vector.broadcast %cst_8 : f32 to vector<8x128xf32>
      %c0_9 = arith.constant 0 : index
      %c0_10 = arith.constant 0 : index
      %13 = vector.load %arg4[%c0_9, %c0_10] : memref<8x128xf32, #tpu.memory_space<vmem>>, vector<8x128xf32>
      tpu.vector_store %arg4[%c0_9, %c0_10], %12 {strides = array<i32>} : memref<8x128xf32, #tpu.memory_space<vmem>>, vector<8x128xf32>,
    } else {
    }
    %c0 = arith.constant 0 : index
    %c0_1 = arith.constant 0 : index
    %3 = vector.load %arg2[%c0, %c0_1] : memref<16x128xf32, #tpu.memory_space<vmem>>, vector<16x128xf32>
    %c0_2 = arith.constant 0 : index
    %c0_3 = arith.constant 0 : index
    %4 = vector.load %arg3[%c0_2, %c0_3] : memref<16x128xf32, #tpu.memory_space<vmem>>, vector<16x128xf32>
    %5 = arith.subf %3, %4 : vector<16x128xf32>
    %6 = arith.mulf %5, %5 : vector<16x128xf32>
    %c0_4 = arith.constant 0 : index
    %c0_5 = arith.constant 0 : index
    %7 = vector.load %arg4[%c0_4, %c0_5] : memref<8x128xf32, #tpu.memory_space<vmem>>, vector<8x128xf32>
    %8 = vector.shape_cast %6 : vector<16x128xf32> to vector<2x8x128xf32>
    %cst = arith.constant dense<0.000000e+00> : vector<8x128xf32>
    %9 = vector.multi_reduction <add>, %8, %cst [0] : vector<2x8x128xf32> to vector<8x128xf32>
    %10 = arith.addf %7, %9 : vector<8x128xf32>
    %c0_6 = arith.constant 0 : index
    %c0_7 = arith.constant 0 : index
    %11 = vector.load %arg4[%c0_6, %c0_7] : memref<8x128xf32, #tpu.memory_space<vmem>>, vector<8x128xf32>
    tpu.vector_store %arg4[%c0_6, %c0_7], %10 {strides = array<i32>} : memref<8x128xf32, #tpu.memory_space<vmem>>, vector<8x128xf32>,
    return
  }
  func.func @transform_0(%arg0: i32, %arg1: i32) -> (i32, i32) {
    %c1_i32 = arith.constant 1 : i32
    %0 = arith.muli %arg0, %c1_i32 : i32
    %1 = arith.addi %0, %arg1 : i32
    %c0_i32 = arith.constant 0 : i32
    %c0_i32_0 = arith.constant 0 : i32
    return %1, %c0_i32 : i32, i32
  }
  func.func @transform_1(%arg0: i32, %arg1: i32) -> (i32, i32) {
    %c1_i32 = arith.constant 1 : i32
    %0 = arith.muli %arg0, %c1_i32 : i32
    %1 = arith.addi %0, %arg1 : i32
    %c0_i32 = arith.constant 0 : i32
    %c0_i32_0 = arith.constant 0 : i32
    return %1, %c0_i32 : i32, i32
  }
  func.func @transform_2(%arg0: i32, %arg1: i32) -> (i32, i32) {
    %c0_i32 = arith.constant 0 : i32
    %c0_i32_0 = arith.constant 0 : i32
    return %arg0, %c0_i32 : i32, i32
  }
}

</mosaic_0001>

<bundles_post_ra>
// kernel: tpu_custom_call.1
= control target key start
LH: loop header
LB: loop body
LE: loop exit
PB: predicated region body
PF: predicated region fallthrough
CT: control target
= control target key end

     0   :  { %7 = vsyncpa [#allocation3], 0  ;;  %s219_s0 = inlined_call_operand.hbm [shape: f32[16,128], index: 0, kind: input, shape index: {}]   ;;  %s220_s1 = inlined_call_operand.hbm [shape: f32[16,128], index: 1, kind: input, shape index: {}]   ;;  %s221_s2 = inlined_call_operand.hbm [shape: f32[8,128], index: 2, kind: output, shape index: {}]  }
   0x1   :  { %8 = vsyncpa [#allocation6], 0 }
   0x2   :  { %9 = vsyncpa [#allocation4], 0  ;;  %s163_s9 = smov [#allocation2]   ;;  %s91_s13 = scalar_lea.hbm %s219_s0, 256 }
   0x3   :  { %s19_s10 = sshll.u32 %s163_s9, 4  ;;  %p92_p0 = scmp.ne.s32.totalorder %s219_s0, %s91_s13  ;;  %s20_s10 = int_to_ptr.vmem [resolvable:$true] %s19_s10 }
   0x4   :  { %p95_p1 = scmp.lt.u32.totalorder %s91_s13, %s219_s0 }
   0x6   :  { %p97_p2 = pnand %p95_p1, %p92_p0 }
   0x8   :  { %100 = shalt.err (!%p97_p2)
}
   0x9   :  { %s101_s18 = scalar_lea.vmem %s20_s10, 256  ;;  %p106_p4 = scmp.lt.s32.totalorder %s20_s10, %s20_s10 }
   0xa   :  { %p102_p3 = scmp.ne.s32.totalorder %s20_s10, %s101_s18  ;;  %p107_p5 = scmp.lt.s32.totalorder %s101_s18, %s101_s18 }
   0xc   :  { %p108_p6 = por %p107_p5, %p106_p4 }
   0xe   :  { %p109_p7 = pnand %p108_p6, %p102_p3 }
  0x10   :  { %112 = shalt.err (!%p109_p7)
}
  0x11   :  { %s164_s19 = smov 128   ;;  %s165_s20 = smov 8  }
  0x12   :  { %25 = dma.hbm_to_vmem [thread:$0]  %s219_s0, 256, %s20_s10, [#allocation3], %s164_s19, %s164_s19, %s165_s20  }
  0x13   :  { %s166_s23 = smov [#allocation5]   ;;  %s113_s27 = scalar_lea.hbm %s220_s1, 256 }
  0x14   :  { %s35_s24 = sshll.u32 %s166_s23, 4  ;;  %p114_p8 = scmp.ne.s32.totalorder %s220_s1, %s113_s27  ;;  %s36_s24 = int_to_ptr.vmem [resolvable:$true] %s35_s24 }
  0x15   :  { %p117_p9 = scmp.lt.u32.totalorder %s113_s27, %s220_s1 }
  0x17   :  { %p119_p10 = pnand %p117_p9, %p114_p8 }
  0x19   :  { %122 = shalt.err (!%p119_p10)
}
  0x1a   :  { %s123_s4 = scalar_lea.vmem %s36_s24, 256  ;;  %p128_p12 = scmp.lt.s32.totalorder %s36_s24, %s36_s24 }
  0x1b   :  { %p124_p11 = scmp.ne.s32.totalorder %s36_s24, %s123_s4  ;;  %p129_p13 = scmp.lt.s32.totalorder %s123_s4, %s123_s4 }
  0x1d   :  { %p130_p0 = por %p129_p13, %p128_p12 }
  0x1f   :  { %p131_p1 = pnand %p130_p0, %p124_p11 }
  0x21   :  { %134 = shalt.err (!%p131_p1)
}
  0x22   :  { %41 = dma.hbm_to_vmem [thread:$0]  %s220_s1, 256, %s36_s24, [#allocation6], %s164_s19, %s164_s19, %s165_s20  }
  0x23   :  { %157 = dma.done.wait [#allocation3], 256  }
  0x24   :  { %158 = vsyncadd [#allocation3], 4294967040 }
  0x25   :  { %159 = dma.done.wait [#allocation6], 256  }
  0x26   :  { %160 = vsyncadd [#allocation6], 4294967040  ;;  %v57_v0 = vld [vmem:[#allocation2] sm:$0xff]  ;;  %v58_v1 = vld [vmem:[#allocation2 + $0x8] sm:$0xff]  ;;  %s167_s6 = smov [#allocation7]  }
  0x27   :  { %v59_v2 = vld [vmem:[#allocation5] sm:$0xff]  ;;  %v60_v3 = vld [vmem:[#allocation5 + $0x8] sm:$0xff]  ;;  %s75_s7 = sshll.u32 %s167_s6, 4  ;;  %s76_s7 = int_to_ptr.vmem [resolvable:$true] %s75_s7 }
  0x28   :  { %v61_v4 = vsub.f32 %v57_v0, %v59_v2  ;;  %v62_v5 = vsub.f32 %v58_v1, %v60_v3  ;;  %s135_s8 = scalar_lea.vmem %s76_s7, 128  ;;  %p140_p3 = scmp.lt.s32.totalorder %s76_s7, %s76_s7 }
  0x29   :  { %p136_p2 = scmp.ne.s32.totalorder %s76_s7, %s135_s8  ;;  %p141_p4 = scmp.lt.s32.totalorder %s135_s8, %s135_s8 }
  0x2a   :  { %v63_v6 = vmul.f32 %v61_v4, %v61_v4  ;;  %v64_v7 = vmul.f32 %v62_v5, %v62_v5 }
  0x2b   :  { %p142_p5 = por %p141_p4, %p140_p3 }
  0x2c   :  { %v66_v8 = vadd.f32 %v64_v7, %v63_v6 }
  0x2d   :  { %p143_p6 = pnand %p142_p5, %p136_p2 }
  0x2e   :  { %68 = vst [vmem:[#allocation7] sm:$0xff] %v66_v8 }
  0x2f   :  { %146 = shalt.err (!%p143_p6)
}
  0x30   :  { %s147_s10 = scalar_lea.hbm %s221_s2, 128 }
  0x31   :  { %p148_p7 = scmp.ne.s32.totalorder %s221_s2, %s147_s10  ;;  %p151_p8 = scmp.lt.u32.totalorder %s147_s10, %s221_s2 }
  0x33   :  { %p153_p9 = pnand %p151_p8, %p148_p7 }
  0x35   :  { %156 = shalt.err (!%p153_p9)
}
  0x36   :  { %78 = dma.vmem_to_hbm [thread:$0]  %s76_s7, 128, %s221_s2, [#allocation4]  }
  0x37   :  { %161 = dma.done.wait [#allocation4], 128  }
  0x38   :  { %162 = vsyncadd [#allocation4], 4294967168 }
  0x39   :  { %82 = vsyncpa [#allocation3], 1 }
  0x3a   :  { %83 = vsyncpa [#allocation6], 1 }
  0x3b   :  { %84 = vsyncpa [#allocation4], 1 }

</bundles_post_ra>
